<compile_context>
chip_gen: v7x
topology: tpu7x:2x2x1
jax: 0.10.0
libtpu: 0.0.40
codegen_flags: <defaults>
</compile_context>

<pallas_src>
import functools

import jax
import jax.numpy as jnp
from jax.experimental import pallas as pl
from jax.experimental.pallas import tpu as pltpu


# Below this many elements the fixed pallas dispatch / pipeline warm-up cost
# dwarfs <1 us of HBM traffic and XLA can fuse the multiply into neighbours
# for free -> use plain jnp.  (Raised per perf review.)
_PALLAS_MIN_ELEMS = 1 << 20

# Byte budget for ONE tile of the largest stream (output is always f32).
# in + out, double-buffered  ->  ~4x this  ~= 8 MiB: inside v5e's 16 MiB
# default scoped VMEM and well inside v7x's 64 MiB physical VMEM.
_TILE_BUDGET_BYTES = 2 * 1024 * 1024
_VMEM_LIMIT_BYTES = 32 * 1024 * 1024   # explicit, safe on v5e/v6e/v7x
_MAX_ROW_BLOCK = 256                   # multiple of 8


def _colorshift_kernel(scale_ref, x_ref, o_ref, *, row_block, num_channels):
    """o = x * scale[row % num_channels].

    scale_ref: SMEM (num_channels,) f32   -- rgb / rgb.sum()
    x_ref:     VMEM (row_block, lane_block) input dtype
    o_ref:     VMEM (row_block, lane_block) f32
    """
    # Absolute row index of every sublane in this tile -> channel id.
    row0 = pl.program_id(0) * row_block
    ch = (row0 + jax.lax.broadcasted_iota(jnp.int32, (row_block, 1), 0)) % num_channels
    # Build the (row_block, 1) per-row scale with a short select chain
    # (num_channels == 3); the lane broadcast happens in the multiply (VPU).
    scale = scale_ref[num_channels - 1]
    for c in range(num_channels - 2, -1, -1):
        scale = jnp.where(ch == c, scale_ref[c], scale)
    o_ref[...] = (x_ref[...].astype(jnp.float32) * scale).astype(o_ref.dtype)


def _round_down(x: int, m: int) -> int:
    return (x // m) * m


def _pick_blocks(rows: int, cols: int, in_dtype, out_dtype):
    """Byte-budgeted, lane-dense tiles.

    Block dims must be a multiple of (8, 128) on the minor dims OR equal to
    the full array dim; partial boundary blocks are masked by Pallas.
    """
    itemsize = max(jnp.dtype(in_dtype).itemsize, jnp.dtype(out_dtype).itemsize)

    # rows = N*C is typically tiny (batch * 3 channels); take it whole.
    row_block = rows if rows <= _MAX_ROW_BLOCK else _MAX_ROW_BLOCK
    padded_rows = ((row_block + 7) // 8) * 8          # sublane padding in VMEM

    if cols <= 128:
        lane_block = cols                              # full dim (legal even if <128)
    else:
        budget_lanes = _TILE_BUDGET_BYTES // (padded_rows * itemsize)
        lane_block = max(128, min(_round_down(budget_lanes, 128),
                                  _round_down(cols, 128)))

    # Keep at least 2 parallel grid steps so both v7x TensorCores get work.
    if (pl.cdiv(rows, row_block) * pl.cdiv(cols, lane_block)) < 2 and lane_block >= 256:
        lane_block = max(128, _round_down(lane_block // 2, 128))

    return row_block, lane_block


def color_shift_single(x: jax.Array, rgb: jax.Array, *, force_pallas: bool = False) -> jax.Array:
    """im * rgb[None, :, None, None] / rgb.sum()  via a lane-dense Pallas kernel."""
    n, c, h, w = x.shape
    assert rgb.shape == (c,), "channel dim must match rgb length"
    out_dtype = jnp.result_type(x.dtype, jnp.float32)
    scale = (rgb / jnp.sum(rgb)).astype(jnp.float32)   # (C,)

    # Tiny / fusable inputs: one XLA multiply beats a separate kernel launch.
    if not force_pallas and x.size < _PALLAS_MIN_ELEMS:
        return (x.astype(out_dtype) * scale[None, :, None, None]).astype(out_dtype)

    rows, cols = n * c, h * w
    x2 = x.reshape(rows, cols)

    row_block, lane_block = _pick_blocks(rows, cols, x.dtype, out_dtype)
    grid = (pl.cdiv(rows, row_block), pl.cdiv(cols, lane_block))

    kernel = functools.partial(_colorshift_kernel, row_block=row_block, num_channels=c)

    out2 = pl.pallas_call(
        kernel,
        out_shape=jax.ShapeDtypeStruct((rows, cols), out_dtype),
        grid=grid,
        in_specs=[
            pl.BlockSpec(memory_space=pltpu.MemorySpace.SMEM),            # (C,) scales
            pl.BlockSpec((row_block, lane_block), lambda i, j: (i, j)),   # image tile
        ],
        out_specs=pl.BlockSpec((row_block, lane_block), lambda i, j: (i, j)),
        compiler_params=pltpu.CompilerParams(
            dimension_semantics=("parallel", "parallel"),
            vmem_limit_bytes=_VMEM_LIMIT_BYTES,
        ),
    )(scale, x2)

    return out2.reshape(n, c, h, w)


class ColorShift:
    """JAX/Pallas equivalent of the PyTorch ColorShift module."""

    def __init__(self, mode: str = "uniform", force_pallas: bool = False):
        self.mode = mode
        self.force_pallas = force_pallas
        self._low = None
        self._high = None
        self._loc = None
        self._std = None

    def setup(self):
        if self.mode == "normal":
            self._loc = jnp.array([0.299, 0.587, 0.114], dtype=jnp.float32)
            self._std = jnp.array([0.1, 0.1, 0.1], dtype=jnp.float32)
        elif self.mode == "uniform":
            self._low = jnp.array([0.199, 0.487, 0.014], dtype=jnp.float32)
            self._high = jnp.array([0.399, 0.687, 0.214], dtype=jnp.float32)

    def _sample_rgb(self, key: jax.Array) -> jax.Array:
        # TODO(synk): sampling stays in plain jax.random (no in-kernel
        # torch.distributions equivalent worth building for a 3-vector).
        if self.mode == "normal":
            return self._loc + self._std * jax.random.normal(key, (3,), dtype=jnp.float32)
        return jax.random.uniform(
            key, (3,), dtype=jnp.float32, minval=self._low, maxval=self._high
        )

    def __call__(self, key: jax.Array, *imgs: jax.Array):
        rgb = self._sample_rgb(key)  # one rgb sample shared by all images
        # One pallas_call per image: the op is HBM-bound (1 read + 1 write per
        # image); concatenating images would add a full extra HBM pass.
        return tuple(
            color_shift_single(im, rgb, force_pallas=self.force_pallas) for im in imgs
        )


if __name__ == "__main__":
    key = jax.random.PRNGKey(0)
    k_img1, k_img2, k_rgb = jax.random.split(key, 3)

    # Small NCHW shapes, 3 color channels (the module is an RGB shift).
    x1 = jax.random.normal(k_img1, (2, 3, 16, 16), dtype=jnp.float32)
    x2 = jax.random.normal(k_img2, (2, 3, 16, 16), dtype=jnp.float32)

    # force_pallas=True so the demo exercises the kernel even though these
    # shapes are below the size cutoff where the jnp fallback would be used.
    module = ColorShift(mode="uniform", force_pallas=True)
    module.setup()

    out1, out2 = module(k_rgb, x1, x2)
    jax.block_until_ready(out1)
    jax.block_until_ready(out2)

    # Reference check against plain JAX semantics (same rgb sample).
    rgb = module._sample_rgb(k_rgb)
    ref1 = x1 * rgb[None, :, None, None] / rgb.sum()
    ref2 = x2 * rgb[None, :, None, None] / rgb.sum()
    assert out1.shape == x1.shape and out2.shape == x2.shape
    assert out1.dtype == jnp.result_type(x1.dtype, jnp.float32)
    assert jnp.allclose(out1, ref1, atol=1e-5, rtol=1e-5), "mismatch on img1"
    assert jnp.allclose(out2, ref2, atol=1e-5, rtol=1e-5), "mismatch on img2"

    print("KERNEL_OK")
</pallas_src>

<mosaic_0001>
module attributes {stable_mosaic.version = 11 : i64} {
  func.func @_colorshift_kernel(%arg0: i32, %arg1: i32, %arg2: memref<3xf32, #tpu.memory_space<smem>>, %arg3: memref<6x128xf32, #tpu.memory_space<vmem>>, %arg4: memref<6x128xf32, #tpu.memory_space<vmem>>) attributes {dimension_semantics = [#tpu.dimension_semantics<parallel>, #tpu.dimension_semantics<parallel>], iteration_bounds = array<i64: 1, 2>, scalar_prefetch = 0 : i64, scratch_operands = 0 : i64, tpu.core_type = #tpu.core_type<tc>, window_params = [{transform_indices = @transform_0, window_bounds = array<i64: 3>}, {transform_indices = @transform_1, window_bounds = array<i64: 6, 128>}, {transform_indices = @transform_2, window_bounds = array<i64: 6, 128>}]} {
    %c6_i32 = arith.constant 6 : i32
    %0 = arith.muli %arg0, %c6_i32 : i32
    %1 = tpu.iota {dimensions = array<i32: 0>} : vector<6x1xi32>
    %2 = vector.broadcast %0 : i32 to vector<6x1xi32>
    %3 = arith.addi %2, %1 : vector<6x1xi32>
    %c3_i32 = arith.constant 3 : i32
    %c0_i32 = arith.constant 0 : i32
    %4 = arith.cmpi eq, %c3_i32, %c0_i32 : i32
    %c1_i32 = arith.constant 1 : i32
    %5 = arith.select %4, %c1_i32, %c3_i32 : i32
    %6 = vector.broadcast %5 : i32 to vector<6x1xi32>
    %7 = arith.remsi %3, %6 : vector<6x1xi32>
    %c0_i32_0 = arith.constant 0 : i32
    %8 = vector.broadcast %c0_i32_0 : i32 to vector<6x1xi32>
    %9 = arith.cmpi ne, %7, %8 : vector<6x1xi32>
    %c0_i32_1 = arith.constant 0 : i32
    %10 = vector.broadcast %c0_i32_1 : i32 to vector<6x1xi32>
    %11 = arith.cmpi slt, %7, %10 : vector<6x1xi32>
    %c0_i32_2 = arith.constant 0 : i32
    %12 = arith.cmpi slt, %5, %c0_i32_2 : i32
    %13 = vector.broadcast %12 : i1 to vector<6x1xi1>
    %14 = vector.broadcast %13 : vector<6x1xi1> to vector<6x1xi1>
    %15 = arith.xori %11, %14 : vector<6x1xi1>
    %16 = arith.andi %15, %9 : vector<6x1xi1>
    %17 = vector.broadcast %5 : i32 to vector<6x1xi32>
    %18 = arith.addi %7, %17 : vector<6x1xi32>
    %19 = arith.select %16, %18, %7 : vector<6x1xi1>, vector<6x1xi32>
    %c2 = arith.constant 2 : index
    %20 = memref.load %arg2[%c2] : memref<3xf32, #tpu.memory_space<smem>>
    %c1_i32_3 = arith.constant 1 : i32
    %21 = vector.broadcast %c1_i32_3 : i32 to vector<6x1xi32>
    %22 = arith.cmpi eq, %19, %21 : vector<6x1xi32>
    %c1 = arith.constant 1 : index
    %23 = memref.load %arg2[%c1] : memref<3xf32, #tpu.memory_space<smem>>
    %24 = vector.broadcast %23 : f32 to vector<6x1xf32>
    %25 = vector.broadcast %20 : f32 to vector<6x1xf32>
    %26 = arith.select %22, %24, %25 : vector<6x1xi1>, vector<6x1xf32>
    %c0_i32_4 = arith.constant 0 : i32
    %27 = vector.broadcast %c0_i32_4 : i32 to vector<6x1xi32>
    %28 = arith.cmpi eq, %19, %27 : vector<6x1xi32>
    %c0 = arith.constant 0 : index
    %29 = memref.load %arg2[%c0] : memref<3xf32, #tpu.memory_space<smem>>
    %30 = vector.broadcast %29 : f32 to vector<6x1xf32>
    %31 = arith.select %28, %30, %26 : vector<6x1xi1>, vector<6x1xf32>
    %c0_5 = arith.constant 0 : index
    %c0_6 = arith.constant 0 : index
    %32 = vector.load %arg3[%c0_5, %c0_6] : memref<6x128xf32, #tpu.memory_space<vmem>>, vector<6x128xf32>
    %33 = vector.broadcast %31 : vector<6x1xf32> to vector<6x128xf32>
    %34 = arith.mulf %32, %33 : vector<6x128xf32>
    %c0_7 = arith.constant 0 : index
    %c0_8 = arith.constant 0 : index
    %35 = vector.load %arg4[%c0_7, %c0_8] : memref<6x128xf32, #tpu.memory_space<vmem>>, vector<6x128xf32>
    tpu.vector_store %arg4[%c0_7, %c0_8], %34 {strides = array<i32>} : memref<6x128xf32, #tpu.memory_space<vmem>>, vector<6x128xf32>,
    return
  }
  func.func @transform_0(%arg0: i32, %arg1: i32) -> i32 {
    %c0_i32 = arith.constant 0 : i32
    %c0_i32_0 = arith.constant 0 : i32
    return %c0_i32 : i32
  }
  func.func @transform_1(%arg0: i32, %arg1: i32) -> (i32, i32) {
    %c0_i32 = arith.constant 0 : i32
    return %arg0, %arg1 : i32, i32
  }
  func.func @transform_2(%arg0: i32, %arg1: i32) -> (i32, i32) {
    %c0_i32 = arith.constant 0 : i32
    return %arg0, %arg1 : i32, i32
  }
}

</mosaic_0001>

<bundles_post_ra>
// kernel: tpu_custom_call.1
= control target key start
LH: loop header
LB: loop body
LE: loop exit
PB: predicated region body
PF: predicated region fallthrough
CT: control target
= control target key end

     0   :  { %7 = vsyncpa [#allocation5], 0  ;;  %s804_s0 = inlined_call_operand.hbm [shape: f32[3], index: 0, kind: input, shape index: {}]   ;;  %s805_s1 = inlined_call_operand.hbm [shape: f32[6,256], index: 1, kind: input, shape index: {}]   ;;  %s806_s2 = inlined_call_operand.hbm [shape: f32[6,256], index: 2, kind: output, shape index: {}]  }
   0x1   :  { %8 = vsyncpa [#allocation3], 0 }
   0x2   :  { %10 = vsyncpa [#allocation3 + $0x1], 0 }
   0x3   :  { %11 = vsyncpa [#allocation4], 0 }
   0x4   :  { %13 = vsyncpa [#allocation4 + $0x1], 0  ;;  %s574_s9 = smov 0   ;;  %s576_s10 = smov 0  }
   0x5   :  { %s578_s11 = smov 0   ;;  %s580_s12 = smov 0  }
   0x6   :  { %s582_s13 = smov 0   ;;  %s584_s14 = smov 0  }
   0x7 LB: > { %s333_s15 = sadd.s32 4294967295, %s554_s14   ;;  %s334_s16 = sadd.s32 4294967294, %s554_s14   ;;  %s554_s14 = sphi %s584_s14, %s19_s14   ;;  %s550_s13 = sphi %s582_s13, %s830_s13   ;;  %s546_s12 = sphi %s580_s12, %s829_s12   ;;  %s542_s11 = sphi %s578_s11, %s828_s11   ;;  %s538_s10 = sphi %s576_s10, %s827_s10   ;;  %s534_s9 = sphi %s574_s9, %s826_s9  }
   0x8   : > { %p74_p0 = scmp.ne.s32.totalorder %s538_s10, %s534_s9  ;;  %p608_p1 = scmp.eq.s32.totalorder %s333_s15, 0 }
   0x9   : > { %p612_p2 = scmp.eq.s32.totalorder %s333_s15, 1  ;;  %p106_p3 = scmp.eq.s32.totalorder %s334_s16, 1 }
   0xa   : > { %s811_s17 = scalar_select %p608_p1, 1, 0 }
   0xb   : > { %p618_p4 = por %p608_p1, %p74_p0  ;;  %p335_p5 = scmp.ge.s32.totalorder %s554_s14, 1 }
   0xc   : > { %p623_p6 = por %p106_p3, %p74_p0  ;;  %p113_p7 = scmp.lt.s32.totalorder %s554_s14, 3 }
   0xd   : > { %s813_s19 = scalar_select %p618_p4, 1, 0 }
   0xe   : > { %s814_s20 = scalar_select %p623_p6, 1, 0 }
   0xf   : > { %p628_p8 = pnand %p335_p5, %p113_p7  ;;  %s28_s22 = sadd.s32 1, %s550_s13 }
  0x10   : > { %p642_p12 = scmp.ge.s32.totalorder %s28_s22, 2  ;;  %s61_s25 = sadd.s32 1, %s542_s11 }
  0x11   : > { %p360_p10 = pneg %p628_p8  ;;  %p68_p13 = scmp.ne.s32.totalorder %s542_s11, %s538_s10 }
  0x12   : > { %p69_p0 = scmp.eq.s32.totalorder %s554_s14, 0  ;;  %s425_s28 = scalar_lea.hbm %s804_s0, 16 }
  0x13   : > { %p638_p11 = pnand %p360_p10, %p608_p1  ;;  %p426_p3 = scmp.ne.s32.totalorder %s804_s0, %s425_s28 }
  0x14   : > { %p432_p9 = scmp.lt.u32.totalorder %s425_s28, %s804_s0 }
  0x15   : > { %p427_p5 = pneg %p638_p11 }
  0x17   : > { %p428_p7 = pnand %p427_p5, %p426_p3 }
  0x19   : > { %p429_p10 = pneg %p428_p7 }
  0x1b   : > { %p434_p6 = pnand %p432_p9, %p429_p10 }
  0x1d   : > { %437 = shalt.err (!%p434_p6)
}
  0x1e   : > { %s556_s5 = smov [#allocation2]   ;;  %s832_s22 = smov (%p642_p12, %s28_s22), 0 }
  0x1f   : > { %363 = dma.hbm_to_smem (!%p638_p11), %s804_s0, 16, %s556_s5, [#allocation5]  }
  0x20   : > { %p673_p6 = por %p69_p0, %p68_p13  ;;  %p682_p9 = por %p612_p2, %p68_p13 }
  0x21   : > { %s57_s16 = ssub.s32 %s550_s13, %s832_s22  ;;  %p373_p3 = scmp.lt.s32.totalorder %s554_s14, 2 }
  0x22   : > { %s819_s15 = scalar_select %p682_p9, 1, 0 }
  0x23   : > { %p59_p5 = scmp.eq.s32.totalorder %s57_s16, 0  ;;  %s135_s23 = sand.u32 1, %s542_s11  }
  0x24   : > { %s338_s24 = sshll.u32 %s135_s23, 3  ;;  %s339_s27 = sshll.u32 %s550_s13, 7 }
  0x25   : > { %s691_s26 = scalar_select %p59_p5, %s542_s11, %s61_s25  }
  0x26   : > { %s697_s30 = scalar_lea.hbm %s805_s1, %s339_s27  ;;  %s139_s18 = scalar_lea.vmem [#allocation6], %s338_s24 }
  0x27   : > { %s148_s3 = sshll.u32 %s139_s18, 4  ;;  %p703_p2 = pnand %p373_p3, %p673_p6  ;;  %s699_s3 = int_to_ptr.vmem [resolvable:$true] %s148_s3 }
  0x28   : > { %s136_s25 = scalar_lea.sflag [#allocation3], %s135_s23  ;;  %s438_s5 = scalar_lea.hbm %s697_s30, 128 }
  0x29   : > { %p439_p11 = scmp.ne.s32.totalorder %s697_s30, %s438_s5  ;;  %p440_p12 = pneg %p703_p2 }
  0x2a   : > { %s443_s16 = scalar_lea.hbm %s805_s1, 256  ;;  %p444_p7 = scmp.lt.u32.totalorder %s697_s30, %s805_s1 }
  0x2b   : > { %p441_p13 = pnand %p440_p12, %p439_p11  ;;  %p445_p10 = scmp.lt.u32.totalorder %s443_s16, %s438_s5 }
  0x2c   : > { %p447_p3 = scmp.lt.u32.totalorder %s438_s5, %s697_s30 }
  0x2d   : > { %p442_p0 = pneg %p441_p13  ;;  %p446_p6 = por %p445_p10, %p444_p7 }
  0x2f   : > { %p448_p5 = por %p447_p3, %p446_p6 }
  0x31   : > { %p449_p9 = pnand %p448_p5, %p442_p0 }
  0x33   : > { %452 = shalt.err (!%p449_p9)
}
  0x34   : > { %s453_s23 = scalar_lea.vmem %s699_s3, 128  ;;  %s557_s27 = smov [#allocation6]  }
  0x35   : > { %p454_p11 = scmp.ne.s32.totalorder %s699_s3, %s453_s23  ;;  %s458_s28 = sshll.u32 %s557_s27, 4  ;;  %s459_s28 = int_to_ptr.vmem [resolvable:$false] %s458_s28 }
  0x36   : > { %s460_s29 = scalar_lea.vmem %s459_s28, 256  ;;  %p461_p1 = scmp.lt.s32.totalorder %s699_s3, %s459_s28 }
  0x37   : > { %p456_p13 = pnand %p454_p11, %p440_p12  ;;  %p462_p7 = scmp.lt.s32.totalorder %s460_s29, %s453_s23 }
  0x39   : > { %p457_p4 = pneg %p456_p13  ;;  %p463_p10 = por %p462_p7, %p461_p1 }
  0x3b   : > { %p464_p6 = pnand %p463_p10, %p457_p4 }
  0x3d   : > { %467 = shalt.err (!%p464_p6)
}
  0x3e   : > { %367 = dma.hbm_to_vmem [thread:$0]  (!%p703_p2), %s697_s30, 128, %s699_s3, %s136_s25  }
  0x3f   : > { %157 = sbr.rel (%p628_p8) target bundleno = 111 (0x6f), region = 28  ;;  %p821_p9 = scmp.ne.s32.totalorder (!%p628_p8), %s811_s17, 0 }
  0x46   : > { %521 = dma.done.wait (%p821_p9), [#allocation5], 16  }
  0x47   : > { %523 = vsyncadd (%p821_p9), [#allocation5], 4294967280  ;;  %s739_s18 = sand.u32 1, %s538_s10   ;;  %p822_p1 = scmp.ne.s32.totalorder %s813_s19, 0 }
  0x48   : > { %s342_s5 = sshll.u32 %s739_s18, 3  ;;  %s164_s4 = scalar_lea.sflag [#allocation3], %s739_s18 }
  0x49   : > { %s167_s6 = scalar_lea.vmem [#allocation6], %s342_s5 }
  0x4a   : > { %525 = dma.done.wait (%p822_p1), %s164_s4, 128  }
  0x4b   : > { %527 = vsyncadd (%p822_p1), %s164_s4, 4294967168 }
  0x4c   : > { %172 = sfence }
  0x4d   : > { %v190_v0 = vlaneseq  ;;  %s344_s17 = sld [smem:[#allocation2 + $0x2]]  ;;  %s345_s21 = sld [smem:[#allocation2 + $0x1]]  ;;  %v220_v12 = vld [vmem:[%s167_s6] sm:$0x3f] }
  0x4e   : > { %s217_s30 = sld [smem:[#allocation2]]  ;;  %s188_s19 = scalar_lea.vmem [#allocation7], %s342_s5 }
  0x4f   : > { %v191_v1 = vshrl.u32 %v190_v0, 7  ;;  %s239_s3 = sshll.u32 %s188_s19, 4  ;;  %s347_s25 = sshll.u32 %s546_s12, 7  ;;  %s752_s3 = int_to_ptr.vmem [resolvable:$true] %s239_s3 }
  0x50   : > { %s757_s8 = scalar_lea.hbm %s806_s2, %s347_s25  ;;  %s224_s24 = scalar_lea.sflag [#allocation4], %s739_s18 }
  0x51   : > { %v747_v2 = vmul.u32.u64.low 2863311531, %v191_v1  ;;  %v748_v3 = vmul.u32.u64.high 2863311531, %v191_v1, %v747_v2  ;;  %s468_s23 = scalar_lea.vmem %s752_s3, 128  ;;  %p823_p8 = scmp.ne.s32.totalorder %s819_s15, 0 }
  0x52   : > { %p469_p4 = scmp.ne.s32.totalorder %s752_s3, %s468_s23  ;;  %s558_s12 = smov [#allocation7]  }
  0x53   : > { %v200_v4 = vshrl.u32 %v748_v3, 1  ;;  %v213_v8 = vstv %s345_s21  ;;  %v214_v9 = vstv %s344_s17  ;;  %s472_s27 = sshll.u32 %s558_s12, 4  ;;  %s473_s27 = int_to_ptr.vmem [resolvable:$false] %s472_s27 }
  0x54   : > { %v218_v11 = vstv %s217_s30  ;;  %p470_p2 = pnand %p469_p4, %p823_p8  ;;  %s474_s28 = scalar_lea.vmem %s473_s27, 256 }
  0x55   : > { %v201_v5 = vmul.u32 3, %v200_v4  ;;  %p475_p0 = scmp.lt.s32.totalorder %s752_s3, %s473_s27  ;;  %p476_p3 = scmp.lt.s32.totalorder %s474_s28, %s468_s23 }
  0x56   : > { %p471_p12 = pneg %p470_p2 }
  0x57   : > { %v202_v6 = vsub.s32 %v191_v1, %v201_v5  ;;  %p477_p5 = por %p476_p3, %p475_p0 }
  0x59   : > { %vm205_vm0 = vcmp.ne.s32.totalorder %v202_v6, 0  ;;  %vm206_vm1 = vcmp.lt.s32.totalorder %v202_v6, 0  ;;  %v208_v7 = vadd.s32 3, %v202_v6  ;;  %p478_p11 = pnand %p477_p5, %p471_p12 }
  0x5a   : > { %vm207_vm2 = vmand %vm206_vm1, %vm205_vm0 }
  0x5b   : > { %v209_v10 = vsel %vm207_vm2, %v208_v7, %v202_v6 }
  0x5c   : > { %vm211_vm3 = vcmp.eq.s32.totalorder %v209_v10, 1  ;;  %vm216_vm4 = vcmp.eq.s32.totalorder %v209_v10, 0 }
  0x5d   : > { %v215_v13 = vsel %vm211_vm3, %v213_v8, %v214_v9 }
  0x5e   : > { %v219_v14 = vsel %vm216_vm4, %v218_v11, %v215_v13 }
  0x5f   : > { %v221_v15 = vmul.f32 %v220_v12, %v219_v14 }
  0x61   : > { %222 = vst [vmem:[%s188_s19] sm:$0x3f] %v221_v15 }
  0x62   : > { %481 = shalt.err (!%p478_p11)
}
  0x63   : > { %s482_s29 = scalar_lea.hbm %s757_s8, 128  ;;  %s486_s4 = scalar_lea.hbm %s806_s2, 256 }
  0x64   : > { %p483_p13 = scmp.ne.s32.totalorder %s757_s8, %s482_s29  ;;  %p487_p6 = scmp.lt.u32.totalorder %s757_s8, %s806_s2 }
  0x65   : > { %p488_p9 = scmp.lt.u32.totalorder %s486_s4, %s482_s29  ;;  %p490_p4 = scmp.lt.u32.totalorder %s482_s29, %s757_s8 }
  0x66   : > { %p484_p7 = pnand %p483_p13, %p823_p8 }
  0x67   : > { %p489_p1 = por %p488_p9, %p487_p6 }
  0x68   : > { %p485_p10 = pneg %p484_p7 }
  0x69   : > { %p491_p2 = por %p490_p4, %p489_p1 }
  0x6b   : > { %p492_p12 = pnand %p491_p2, %p485_p10 }
  0x6d   : > { %495 = shalt.err (!%p492_p12)
}
  0x6e   : > { %358 = dma.vmem_to_hbm [thread:$0]  (%p823_p8), %s752_s3, 128, %s757_s8, %s224_s24  }
  0x6f PF: > { %s251_s21 = sand.u32 1, %s534_s9   ;;  %p824_p0 = scmp.ne.s32.totalorder %s814_s20, 0 }
  0x70   : > { %p825_p3 = scmp.ge.s32.totalorder %s554_s14, 2  ;;  %s252_s30 = scalar_lea.sflag [#allocation4], %s251_s21 }
  0x72   : > { %p369_p5 = pnand %p825_p3, %p824_p0 }
  0x74   : > { %529 = dma.done.wait (!%p369_p5), %s252_s30, 128  }
  0x75   : > { %531 = vsyncadd (!%p369_p5), %s252_s30, 4294967168  ;;  %s19_s14 = sadd.s32 1, %s554_s14   ;;  %s826_s9 = smov %s538_s10 }
  0x76   : > { %p16_p11 = scmp.ge.s32.totalorder %s19_s14, 4   ;;  %s827_s10 = smov %s542_s11 }
  0x77   : > { %s828_s11 = smov %s691_s26  ;;  %s829_s12 = smov %s550_s13 }
  0x78   : > { %s830_s13 = smov %s832_s22  ;;  %18 = sbr.rel (!%p16_p11) target bundleno = 7 (0x7), region = 78 }
  0x7f   :  { %257 = vsyncpa [#allocation3], 1 }
  0x80   :  { %259 = vsyncpa [#allocation3 + $0x1], 1 }
  0x81   :  { %260 = vsyncpa [#allocation4], 1 }
  0x82   :  { %262 = vsyncpa [#allocation4 + $0x1], 1 }
  0x83   :  { %263 = vsyncpa [#allocation5], 1 }
  0x84   :  { %265 = vsyncpa [#allocation5 + $0x1], 1 }

</bundles_post_ra>
